<compile_context>
chip_gen: v7x
topology: tpu7x:2x2x1
jax: 0.10.0
libtpu: 0.0.40
codegen_flags: <defaults>
</compile_context>

<pallas_src>
import functools

import jax
import jax.numpy as jnp
from jax.experimental import pallas as pl
from jax.experimental.pallas import tpu as pltpu


_TM_TARGET = 512                       # target token tile (amortizes ~600-cycle/step overhead)
_VMEM_BUDGET = 36 * 1024 * 1024        # conservative working-set budget (v7x: 64 MiB / TC)
_VMEM_LIMIT = 40 * 1024 * 1024         # explicit scoped-VMEM limit passed to Mosaic


def _router_kernel(seed_ref, x_ref, w_ref, *rest, jitter, has_bias, compute_dtype):
    # seed_ref : (1,) int32 in SMEM (scalar prefetch; only used when jitter > 0)
    # x_ref    : (tm, H) token tile
    # w_ref    : (H, E)  pre-transposed, pre-cast classifier weight (VMEM resident)
    # b_ref    : (1, E)  f32 bias (only when has_bias)
    if has_bias:
        b_ref, probs_ref, logits_ref = rest
    else:
        probs_ref, logits_ref = rest

    x = x_ref[...]
    if x.dtype != compute_dtype:
        x = x.astype(compute_dtype)

    if jitter > 0.0:
        # multiplicative uniform noise in [1 - jitter, 1 + jitter), as in the reference
        # (different RNG stream than torch.uniform_, of course).
        pltpu.prng_seed(seed_ref[0] + pl.program_id(0))
        bits = pltpu.bitcast(pltpu.prng_random_bits(x.shape), jnp.uint32)
        u = (bits >> 8).astype(jnp.float32) * (1.0 / (1 << 24))      # uniform [0, 1)
        noise = (1.0 - jitter) + (2.0 * jitter) * u
        x = (x.astype(jnp.float32) * noise).astype(compute_dtype)

    # logits = x @ W^T, with W already stored as (H, E): MXU matmul, f32 accumulate,
    # no in-kernel relayout and no per-iteration operand casts.
    logits = jnp.dot(x, w_ref[...], preferred_element_type=jnp.float32)
    if has_bias:
        logits = logits + b_ref[...]

    logits_ref[...] = logits.astype(logits_ref.dtype)

    # softmax along the expert axis (dim=-1, token-choice routing), computed in f32.
    m = jnp.max(logits, axis=-1, keepdims=True)
    e = jnp.exp(logits - m)
    denom = jnp.sum(e, axis=-1, keepdims=True)
    probs = e * pl.reciprocal(denom, approx=True)    # EUP vrcp slot (otherwise idle)
    probs_ref[...] = probs.astype(probs_ref.dtype)
    # TODO(synk): when E < 128 the output stores are lane-masked (vst.msk); if this shows
    # up in profiles, pad E to a lane-friendly width in the wrapper and slice outside.


class RouterBasePallas:
    """JAX/Pallas port of balm RouterBase._compute_router_probabilities."""

    def __init__(self, embed_dim, num_experts, expert_capacity,
                 dtype='float32', bias=False, jitter=0.0,
                 num_routable_experts=None, seed=0):
        self.embed_dim = embed_dim
        self.num_experts = num_experts
        self.expert_capacity = expert_capacity
        self.dtype = jnp.dtype(dtype)
        self.bias = bool(bias)
        self.jitter = float(jitter)
        out_dim = num_routable_experts if num_routable_experts is not None else num_experts
        self.out_dim = out_dim

        # Deterministic parameter init (nn.Linear convention: weight (E, H), bias (E,)).
        k_w, k_b = jax.random.split(jax.random.PRNGKey(seed))
        bound = 1.0 / (embed_dim ** 0.5)
        self.weight = jax.random.uniform(
            k_w, (out_dim, embed_dim), minval=-bound, maxval=bound,
            dtype=jnp.float32).astype(self.dtype)
        # One-time transpose + cast at init so the kernel never relayouts / recasts it.
        self.weight_t = jnp.asarray(self.weight.T)                     # (H, E), self.dtype

        if self.bias:
            self.bias_param = jax.random.uniform(
                k_b, (out_dim,), minval=-bound, maxval=bound,
                dtype=jnp.float32).astype(self.dtype)
            self.bias2 = self.bias_param.astype(jnp.float32).reshape(1, out_dim)
        else:
            self.bias_param = None
            self.bias2 = None

    def compute_router_probabilities(self, x, seed=0):
        """x: (B, S, H). Returns (probs (B,S,E) in x.dtype, logits (B,S,E) in router dtype)."""
        input_dtype = x.dtype
        B, S, H = x.shape
        assert H == self.embed_dim
        E = self.out_dim
        T = B * S
        x2 = x.reshape(T, H)

        x_bytes = jnp.dtype(input_dtype).itemsize
        w_bytes = jnp.dtype(self.dtype).itemsize
        out_bytes = jnp.dtype(input_dtype).itemsize + jnp.dtype(self.dtype).itemsize

        # ----- token-tile selection: as large as the VMEM budget allows (mem-bound op) -----
        def vmem_need(t):
            return (2 * t * H * x_bytes          # double-buffered x tiles
                    + H * E * w_bytes            # resident (untiled) weight
                    + E * 4                      # bias
                    + 2 * t * E * out_bytes      # double-buffered outputs
                    + 4 * t * E * 4)             # f32 temporaries (logits/exp/etc.)

        tm = _TM_TARGET
        while tm > 8 and vmem_need(tm) > _VMEM_BUDGET:
            tm //= 2
        if T <= tm:
            tm = T                               # single block; block == full token dim

        num_blocks = pl.cdiv(T, tm)
        T_pad = num_blocks * tm
        if T_pad != T:                           # ragged token count: zero-pad, slice after
            x2 = jnp.pad(x2, ((0, T_pad - T), (0, 0)))

        seed_arr = jnp.asarray([seed], dtype=jnp.int32)

        in_specs = [
            pl.BlockSpec((tm, H), lambda i, s: (i, 0)),                 # x tile (pipelined)
            pl.BlockSpec(memory_space=pltpu.MemorySpace.VMEM),          # weight: resident, no 2x buffer
        ]
        inputs = [x2, self.weight_t]
        if self.bias:
            in_specs.append(pl.BlockSpec(memory_space=pltpu.MemorySpace.VMEM))
            inputs.append(self.bias2)

        kernel = functools.partial(
            _router_kernel,
            jitter=self.jitter,
            has_bias=self.bias,
            compute_dtype=self.dtype,
        )

        probs2, logits2 = pl.pallas_call(
            kernel,
            out_shape=(
                jax.ShapeDtypeStruct((T_pad, E), input_dtype),   # probabilities (input dtype)
                jax.ShapeDtypeStruct((T_pad, E), self.dtype),    # raw logits (router dtype)
            ),
            grid_spec=pltpu.PrefetchScalarGridSpec(
                num_scalar_prefetch=1,                           # seed scalar (SMEM)
                grid=(num_blocks,),
                in_specs=in_specs,
                out_specs=[
                    pl.BlockSpec((tm, E), lambda i, s: (i, 0)),
                    pl.BlockSpec((tm, E), lambda i, s: (i, 0)),
                ],
            ),
            compiler_params=pltpu.CompilerParams(
                dimension_semantics=("parallel",),               # token axis shards across TCs (v7x)
                vmem_limit_bytes=_VMEM_LIMIT),
            cost_estimate=pl.CostEstimate(
                flops=2 * T * H * E,
                bytes_accessed=T * H * x_bytes + H * E * w_bytes + T * E * out_bytes,
                transcendentals=T * E),
        )(seed_arr, *inputs)

        if T_pad != T:
            probs2 = probs2[:T]
            logits2 = logits2[:T]
        return probs2.reshape(B, S, E), logits2.reshape(B, S, E)


if __name__ == "__main__":
    # Small shapes consistent with the module: (batch, seq, embed_dim)
    B, S, H, E = 2, 8, 32, 8
    key = jax.random.PRNGKey(0)
    x = jax.random.normal(key, (B, S, H), dtype=jnp.float32)

    # --- bias=False (default) path ---
    router = RouterBasePallas(embed_dim=H, num_experts=E, expert_capacity=4,
                              dtype='float32', bias=False, jitter=0.0, seed=0)
    probs, logits = router.compute_router_probabilities(x)
    jax.block_until_ready((probs, logits))

    ref_logits = jnp.einsum("bsh,eh->bse", x, router.weight)
    ref_probs = jax.nn.softmax(ref_logits, axis=-1)
    assert jnp.allclose(logits, ref_logits, atol=1e-5, rtol=1e-5)
    # probs use the EUP approximate reciprocal -> slightly looser tolerance
    assert jnp.allclose(probs, ref_probs, atol=2e-3, rtol=2e-3)

    # --- bias=True path ---
    router_b = RouterBasePallas(embed_dim=H, num_experts=E, expert_capacity=4,
                                dtype='float32', bias=True, jitter=0.0, seed=1)
    probs_b, logits_b = router_b.compute_router_probabilities(x)
    jax.block_until_ready((probs_b, logits_b))

    ref_logits_b = jnp.einsum("bsh,eh->bse", x, router_b.weight) + router_b.bias_param
    ref_probs_b = jax.nn.softmax(ref_logits_b, axis=-1)
    assert jnp.allclose(logits_b, ref_logits_b, atol=1e-5, rtol=1e-5)
    assert jnp.allclose(probs_b, ref_probs_b, atol=2e-3, rtol=2e-3)

    print("KERNEL_OK")
</pallas_src>

<mosaic_0001>
module attributes {stable_mosaic.version = 11 : i64} {
  func.func @_router_kernel(%arg0: i32, %arg1: memref<1xi32, #tpu.memory_space<smem>>, %arg2: memref<16x32xf32, #tpu.memory_space<vmem>>, %arg3: memref<32x8xf32, #tpu.memory_space<vmem>>, %arg4: memref<16x8xf32, #tpu.memory_space<vmem>>, %arg5: memref<16x8xf32, #tpu.memory_space<vmem>>) attributes {dimension_semantics = [#tpu.dimension_semantics<parallel>], iteration_bounds = array<i64: 1>, scalar_prefetch = 1 : i64, scratch_operands = 0 : i64, tpu.core_type = #tpu.core_type<tc>, window_params = [{transform_indices = @transform_0, window_bounds = array<i64: 16, 32>}, {pipeline_mode = #tpu.pipeline_mode<synchronous>, transform_indices = @transform_1, window_bounds = array<i64: 32, 8>}, {transform_indices = @transform_2, window_bounds = array<i64: 16, 8>}, {transform_indices = @transform_3, window_bounds = array<i64: 16, 8>}]} {
    %c0 = arith.constant 0 : index
    %c0_0 = arith.constant 0 : index
    %0 = vector.load %arg2[%c0, %c0_0] : memref<16x32xf32, #tpu.memory_space<vmem>>, vector<16x32xf32>
    %c0_1 = arith.constant 0 : index
    %c0_2 = arith.constant 0 : index
    %1 = vector.load %arg3[%c0_1, %c0_2] : memref<32x8xf32, #tpu.memory_space<vmem>>, vector<32x8xf32>
    %cst = arith.constant dense<0.000000e+00> : vector<16x8xf32>
    %2 = tpu.matmul %0, %1, %cst {dimension_numbers = #tpu.dot_dimension_numbers<[1], [0], [0], [1], [0, 0, 1, 1], [], []>} : vector<16x32xf32>, vector<32x8xf32>, vector<16x8xf32> -> vector<16x8xf32>
    %c0_3 = arith.constant 0 : index
    %c0_4 = arith.constant 0 : index
    %3 = vector.load %arg5[%c0_3, %c0_4] : memref<16x8xf32, #tpu.memory_space<vmem>>, vector<16x8xf32>
    tpu.vector_store %arg5[%c0_3, %c0_4], %2 {strides = array<i32>} : memref<16x8xf32, #tpu.memory_space<vmem>>, vector<16x8xf32>,
    %cst_5 = arith.constant dense<0xFF800000> : vector<16xf32>
    %4 = vector.multi_reduction <maximumf>, %2, %cst_5 [1] : vector<16x8xf32> to vector<16xf32>
    %5 = vector.shape_cast %4 : vector<16xf32> to vector<16x1xf32>
    %6 = vector.broadcast %5 : vector<16x1xf32> to vector<16x8xf32>
    %7 = arith.subf %2, %6 : vector<16x8xf32>
    %8 = math.exp %7 : vector<16x8xf32>
    %cst_6 = arith.constant dense<0.000000e+00> : vector<16xf32>
    %9 = vector.multi_reduction <add>, %8, %cst_6 [1] : vector<16x8xf32> to vector<16xf32>
    %10 = vector.shape_cast %9 : vector<16xf32> to vector<16x1xf32>
    %11 = tpu.reciprocal %10 {approx = true} : vector<16x1xf32> -> vector<16x1xf32>
    %12 = vector.broadcast %11 : vector<16x1xf32> to vector<16x8xf32>
    %13 = arith.mulf %8, %12 : vector<16x8xf32>
    %c0_7 = arith.constant 0 : index
    %c0_8 = arith.constant 0 : index
    %14 = vector.load %arg4[%c0_7, %c0_8] : memref<16x8xf32, #tpu.memory_space<vmem>>, vector<16x8xf32>
    tpu.vector_store %arg4[%c0_7, %c0_8], %13 {strides = array<i32>} : memref<16x8xf32, #tpu.memory_space<vmem>>, vector<16x8xf32>,
    return
  }
  func.func @transform_0(%arg0: i32, %arg1: memref<1xi32, #tpu.memory_space<smem>>) -> (i32, i32) {
    %c0_i32 = arith.constant 0 : i32
    %c0_i32_0 = arith.constant 0 : i32
    return %arg0, %c0_i32 : i32, i32
  }
  func.func @transform_1(%arg0: i32, %arg1: memref<1xi32, #tpu.memory_space<smem>>) -> (i32, i32) {
    %c0_i32 = arith.constant 0 : i32
    %c0_i32_0 = arith.constant 0 : i32
    %c0_i32_1 = arith.constant 0 : i32
    return %c0_i32, %c0_i32_0 : i32, i32
  }
  func.func @transform_2(%arg0: i32, %arg1: memref<1xi32, #tpu.memory_space<smem>>) -> (i32, i32) {
    %c0_i32 = arith.constant 0 : i32
    %c0_i32_0 = arith.constant 0 : i32
    return %arg0, %c0_i32 : i32, i32
  }
  func.func @transform_3(%arg0: i32, %arg1: memref<1xi32, #tpu.memory_space<smem>>) -> (i32, i32) {
    %c0_i32 = arith.constant 0 : i32
    %c0_i32_0 = arith.constant 0 : i32
    return %arg0, %c0_i32 : i32, i32
  }
}

</mosaic_0001>

<bundles_post_ra>
// kernel: tpu_custom_call.1
= control target key start
LH: loop header
LB: loop body
LE: loop exit
PB: predicated region body
PF: predicated region fallthrough
CT: control target
= control target key end

     0   :  { %vm21_vm0 = vcmask 261120   ;;  %vm103_vm1 = vcmask 64512   ;;  %s236_s0 = inlined_call_operand.<no memory space> [shape: s32[1], index: 0, kind: input, shape index: {}]   ;;  %s237_s2 = inlined_call_operand.vmem [shape: f32[32,8], index: 2, kind: input, shape index: {}]   ;;  %s238_s1 = inlined_call_operand.vmem [shape: f32[16,32], index: 1, kind: input, shape index: {}]   ;;  %s239_s4 = inlined_call_operand.vmem [shape: f32[16,8], index: 4, kind: output, shape index: {1}]   ;;  %s240_s3 = inlined_call_operand.vmem [shape: f32[16,8], index: 3, kind: output, shape index: {0}]  }
   0x1   :  { %v17_v0 = vld [vmem:[%s237_s2] sm:$0xff]  ;;  %v18_v1 = vld [vmem:[%s237_s2 + $0x8] sm:$0xff]  ;;  %v19_v2 = vld [vmem:[%s237_s2 + $0x10] sm:$0xff] }
   0x2   :  { %v157_v3 = vpack.c.bf16 %v18_v1, %v17_v0  ;;  %v20_v4 = vld [vmem:[%s237_s2 + $0x18] sm:$0xff]  ;;  %v15_v5 = vld [vmem:[%s238_s1] sm:$0xff]  ;;  %v16_v7 = vld [vmem:[%s238_s1 + $0x8] sm:$0xff] }
   0x3   :  { %v161_v6 = vpack.c.bf16 %v20_v4, %v19_v2  ;;  %154 = vmatprep.mubr.msk.f32.mxu0 %vm21_vm0, %v15_v5 }
   0x4   :  { %158 = vmatprep.subr.bf16.mxu0 %v157_v3 }
   0x5   :  { %160 = vmatpush3.bf16.msra.mxu0 %v157_v3 }
   0x6   :  { %162 = vmatprep.subr.bf16.mxu0 %v161_v6 }
   0x9   :  { %164 = vmatpush3.bf16.msra.mxu0 %v161_v6 }
   0xc   :  { %155 = vmatmul.mubr.msk.f32.vlgmr.msra.gmra.mrb[0].mxu0 %vm21_vm0, %v16_v7 }
  0xdf   :  { %v156_v8 = vpop.f32.mrb[0].mxu0 }
  0xe0   :  { %105 = vst.msk [vmem:[%s239_s4 + $0x8] sm:$0xff] %vm103_vm1, %v156_v8  ;;  %v94_v9 = vpop.f32.mrb[1].mxu0  ;;  %v109_v11 = vsel %vm103_vm1, %v156_v8, -inf }
  0xe1   :  { %104 = vst.msk [vmem:[%s239_s4] sm:$0xff] %vm103_vm1, %v94_v9  ;;  %v106_v10 = vsel %vm103_vm1, %v94_v9, -inf }
  0xe2   :  { %107 = vmax.xlane.f32.xlu0 %v106_v10 }
  0xe6   :  { %110 = vmax.xlane.f32.xlu0 %v109_v11 }
 0x16f   :  { %v108_v12 = vpop.xlane.xlu0 %107 }
 0x170   :  { %v112_v13 = vsub.f32 %v94_v9, %v108_v12 }
 0x172   :  { %v114_v14 = vmul.f32 1.442695, %v112_v13 }
 0x173   :  { %v111_v15 = vpop.xlane.xlu0 %110 }
 0x174   :  { %165 = vpow2.f32 %v114_v14  ;;  %v113_v16 = vsub.f32 %v156_v8, %v111_v15 }
 0x176   :  { %v116_v17 = vmul.f32 1.442695, %v113_v16 }
 0x178   :  { %167 = vpow2.f32 %v116_v17 }
 0x17e   :  { %v166_v18 = vpop.eup %165 }
 0x17f   :  { %v118_v19 = vsel %vm103_vm1, %v166_v18, 0.0 }
 0x180   :  { %119 = vadd.xlane.f32.xlu1 %v118_v19 }
 0x182   :  { %v168_v20 = vpop.eup %167 }
 0x183   :  { %v121_v21 = vsel %vm103_vm1, %v168_v20, 0.0 }
 0x184   :  { %122 = vadd.xlane.f32.xlu1 %v121_v21 }
 0x20d   :  { %v120_v22 = vpop.xlane.xlu1 %119 }
 0x20e   :  { %169 = vrcp.f32 %v120_v22 }
 0x211   :  { %v123_v23 = vpop.xlane.xlu1 %122 }
 0x212   :  { %171 = vrcp.f32 %v123_v23 }
 0x218   :  { %v170_v24 = vpop.eup %169 }
 0x219   :  { %v126_v25 = vmul.f32 %v170_v24, %v166_v18 }
 0x21b   :  { %128 = vst.msk [vmem:[%s240_s3] sm:$0xff] %vm103_vm1, %v126_v25 }
 0x21c   :  { %v172_v26 = vpop.eup %171 }
 0x21d   :  { %v127_v27 = vmul.f32 %v172_v26, %v168_v20 }
 0x21f   :  { %129 = vst.msk [vmem:[%s240_s3 + $0x8] sm:$0xff] %vm103_vm1, %v127_v27 }

</bundles_post_ra>
